<compile_context>
chip_gen: v5e
topology: v5e:2x2
jax: 0.10.0
libtpu: 0.0.40
codegen_flags: <defaults>
</compile_context>

<pallas_src>
import numpy as np
import jax
import jax.numpy as jnp
from jax import lax
from jax.experimental import pallas as pl
from jax.experimental.pallas import tpu as pltpu


# -----------------------------------------------------------------------------
# Fused kernel: conv (block-diag matmul, channels on sublanes) + 2x2 max-pool
# + bias + ReLU + fully-connected layer, all on the MXU/VPU, no reshapes.
# -----------------------------------------------------------------------------
def _make_fused_kernel(static):
    n_banks = static["n_banks"]
    bf = static["bf"]            # B * F_max   (conv/pool row count, sublanes)
    kpad = static["kpad"]        # B * k_max^2 (padded contraction length)
    fcc = static["fcc"]          # F_max * C   (fc column-block width)
    b_sz = static["batch"]
    c_sz = static["class_size"]
    o_dm, o_g, o_sel, o_fcb = static["pack_offs"]

    def kernel(slab_ref, wconv_ref, wfc_ref, pack_ref, o_ref):
        # Static 0/1 selector constants + fc bias, packed into one ref with
        # 8-row-aligned blocks (cheap static slices, fewer DMA descriptors).
        dmask = pack_ref[o_dm:o_dm + bf, 0:fcc]      # (B*F, F*C) keep f == f'
        gmat = pack_ref[o_g:o_g + fcc, 0:c_sz]       # (F*C, C)   sum f' blocks
        sel = pack_ref[o_sel:o_sel + b_sz, 0:bf]     # (B, B*F)   sum f within b
        fcb = pack_ref[o_fcb:o_fcb + 1, 0:c_sz]      # (1, C)

        out = jnp.zeros((b_sz, c_sz), jnp.float32)
        for i in range(n_banks):
            wcb = wconv_ref[i]                       # (B*F, B*kk_max + 1)
            w = wcb[:, 0:kpad]                       # block-diag conv weight
            bias = wcb[:, kpad:kpad + 1]             # (B*F, 1)

            # Conv + 2x2/2 max-pool: the 4 pool positions are 4 identically
            # laid-out matmuls; pool-max is straight elementwise VPU work.
            m = None
            for p in range(4):
                c = jnp.dot(w, slab_ref[i, p],
                            preferred_element_type=jnp.float32)   # (B*F, S)
                m = c if m is None else jnp.maximum(m, c)
            # bias + ReLU after the max (exact: shared bias, monotone ReLU).
            pooled = jnp.maximum(m + bias, 0.0)                    # (B*F, S)

            # Fully-connected layer on the MXU:
            #   A[bF+f, f'C+c] = sum_s pooled[bF+f, s] * wfc[f', s, c]
            #   keep f == f' (dmask), sum f' blocks (gmat), sum f per b (sel).
            a = jnp.dot(pooled, wfc_ref[i],
                        preferred_element_type=jnp.float32)        # (B*F, F*C)
            y = jnp.dot(a * dmask, gmat,
                        preferred_element_type=jnp.float32)        # (B*F, C)
            out = out + jnp.dot(sel, y,
                                preferred_element_type=jnp.float32)  # (B, C)

        o_ref[...] = out + fcb

    return kernel


def _full_spec(shape):
    return pl.BlockSpec(shape, lambda i: (0,) * len(shape))


# -----------------------------------------------------------------------------
# One-time parameter / layout prep (hoisted out of the per-call forward).
# -----------------------------------------------------------------------------
def _pack_rows(mats):
    """Pack small 2-D f32 constants into one array with 8-row-aligned blocks."""
    width = max(m.shape[1] for m in mats)
    blocks, offs, off = [], [], 0
    for m in mats:
        rpad = -(-m.shape[0] // 8) * 8
        blocks.append(jnp.pad(m.astype(jnp.float32),
                              ((0, rpad - m.shape[0]), (0, width - m.shape[1]))))
        offs.append(off)
        off += rpad
    return jnp.concatenate(blocks, axis=0), tuple(offs)


def prepare_params(params, cfg):
    b_sz = cfg["BATCH_SIZE"]
    c_sz = cfg["CLASS_SIZE"]
    l_len = cfg["MAX_SENT_LEN"]
    d_dim = cfg["WORD_DIM"]
    filters = cfg["FILTERS"]
    f_nums = cfg["FILTER_NUM"]

    banks = []
    for k in filters:
        banks.append((k, (l_len - k + 1) // 2, (d_dim - k + 1) // 2))
    kk_max = max(k * k for k in filters)
    s_max = max(hp * wp for (_, hp, wp) in banks)
    f_max = max(f_nums)
    bf = b_sz * f_max
    kpad = b_sz * kk_max
    fcc = f_max * c_sz

    wconv_blocks, wfc_blocks = [], []
    fc_off = 0
    for i, (k, hp, wp) in enumerate(banks):
        f_num = f_nums[i]
        kk = k * k
        s_sz = hp * wp

        # Block-diagonal conv weight (B*Fmax, B*kkmax) with bias as last column.
        w_flat = params["conv_w"][i].reshape(f_num, kk)
        w_flat = jnp.pad(w_flat, ((0, f_max - f_num), (0, kk_max - kk)))
        wblk = jnp.kron(jnp.eye(b_sz, dtype=jnp.float32), w_flat)
        bias = jnp.pad(params["conv_b"][i], (0, f_max - f_num)).reshape(f_max, 1)
        bias = jnp.tile(bias, (b_sz, 1))
        wconv_blocks.append(jnp.concatenate([wblk, bias], axis=1))

        # fc weight block permuted to (S, Fmax*C); zero rows for padded s,
        # zero columns for padded channels -> padding is numerically exact.
        blk = params["fc_w"][:, fc_off:fc_off + f_num * s_sz]
        blk = blk.reshape(c_sz, f_num, s_sz)
        blk = jnp.pad(blk, ((0, 0), (0, f_max - f_num), (0, 0)))
        wfc = jnp.transpose(blk, (2, 1, 0)).reshape(s_sz, fcc)
        wfc_blocks.append(jnp.pad(wfc, ((0, s_max - s_sz), (0, 0))))
        fc_off += f_num * s_sz

    wconv_all = jnp.stack(wconv_blocks, axis=0)      # (nb, B*Fmax, B*kkmax+1)
    wfc_all = jnp.stack(wfc_blocks, axis=0)          # (nb, Smax, Fmax*C)

    # Constant 0/1 selectors (depend only on B, Fmax, C) + fc bias, packed.
    dmask = np.zeros((bf, fcc), np.float32)
    for b in range(b_sz):
        for f in range(f_max):
            dmask[b * f_max + f, f * c_sz:(f + 1) * c_sz] = 1.0
    gmat = np.tile(np.eye(c_sz, dtype=np.float32), (f_max, 1))        # (F*C, C)
    sel = np.repeat(np.eye(b_sz, dtype=np.float32), f_max, axis=1)    # (B, B*F)
    packed, offs = _pack_rows([jnp.asarray(dmask), jnp.asarray(gmat),
                               jnp.asarray(sel),
                               params["fc_b"].reshape(1, c_sz)])

    static = dict(
        n_banks=len(filters), banks=tuple(banks), kk_max=kk_max, s_max=s_max,
        f_max=f_max, bf=bf, kpad=kpad, fcc=fcc, batch=b_sz, class_size=c_sz,
        pack_offs=offs,
    )
    return dict(wconv_all=wconv_all, wfc_all=wfc_all, packed=packed), static


# -----------------------------------------------------------------------------
# Forward: embedding gather + im2col layout glue (XLA, fused under jit) + ONE
# pallas_call for conv + pool + bias + ReLU + FC.
# -----------------------------------------------------------------------------
def _im2col_pooled(x, k, hp, wp):
    """(B, L, D) -> (4, B, k*k, hp*wp): pool-position-major patch slab."""
    b_sz = x.shape[0]
    pos = []
    for di in range(2):
        for dj in range(2):
            taps = []
            for p in range(k):
                for q in range(k):
                    win = x[:, di + p:di + p + 2 * hp:2,
                            dj + q:dj + q + 2 * wp:2]           # (B, hp, wp)
                    taps.append(win.reshape(b_sz, hp * wp))
            pos.append(jnp.stack(taps, axis=1))                 # (B, k*k, S)
    return jnp.stack(pos, axis=0)                               # (4, B, k*k, S)


def build_forward(cfg, static):
    b_sz = static["batch"]
    c_sz = static["class_size"]
    kk_max = static["kk_max"]
    s_max = static["s_max"]
    banks = static["banks"]
    kernel = _make_fused_kernel(static)

    def forward(inp, emb, wconv_all, wfc_all, packed):
        # Embedding lookup (parameter-table gather) stays in XLA.
        x = jnp.take(emb, inp, axis=0).astype(jnp.float32)      # (B, L, D)

        # TODO(synk): training-mode dropout (torch RNG) not reproduced;
        # inference semantics (dropout == identity) are implemented.

        # im2col patch slabs, one per filter bank, pool positions leading.
        # At scaled B/L/D this windowing should move inside the kernel (from
        # the VMEM-resident x) to cut HBM traffic ~k^2 x; at this size the XLA
        # glue fuses with the gather under jit.
        slabs = []
        for (k, hp, wp) in banks:
            s = _im2col_pooled(x, k, hp, wp)                    # (4, B, kk, S)
            s = jnp.pad(s, ((0, 0), (0, 0),
                            (0, kk_max - k * k), (0, s_max - hp * wp)))
            slabs.append(s.reshape(4, b_sz * kk_max, s_max))
        slab_all = jnp.stack(slabs, axis=0)          # (nb, 4, B*kkmax, Smax)

        args = (slab_all, wconv_all, wfc_all, packed)
        # grid=(1,): the whole problem fits VMEM.  At scale, make batch a
        # leading "parallel" grid axis (v7x megacore) and set vmem_limit_bytes
        # for v7x's 64 MiB VMEM.
        return pl.pallas_call(
            kernel,
            out_shape=jax.ShapeDtypeStruct((b_sz, c_sz), jnp.float32),
            grid=(1,),
            in_specs=[_full_spec(a.shape) for a in args],
            out_specs=_full_spec((b_sz, c_sz)),
            compiler_params=pltpu.CompilerParams(
                dimension_semantics=("arbitrary",)),
        )(*args)

    return jax.jit(forward)


# -----------------------------------------------------------------------------
# Pure-JAX reference for verification
# -----------------------------------------------------------------------------
def cnn2d_reference(inp, params, cfg):
    b_sz, l_len = inp.shape
    d_dim = cfg["WORD_DIM"]
    x = params["emb"][inp].reshape(b_sz, 1, l_len, d_dim)
    feats = []
    for i, k in enumerate(cfg["FILTERS"]):
        f_num = cfg["FILTER_NUM"][i]
        conv = lax.conv_general_dilated(
            x, params["conv_w"][i], (1, 1), "VALID",
            dimension_numbers=("NCHW", "OIHW", "NCHW"),
        ) + params["conv_b"][i].reshape(1, f_num, 1, 1)
        conv = jnp.maximum(conv, 0.0)
        pooled = lax.reduce_window(
            conv, -jnp.inf, lax.max,
            window_dimensions=(1, 1, 2, 2), window_strides=(1, 1, 2, 2),
            padding="VALID",
        )
        feats.append(pooled.reshape(b_sz, -1))
    feat = jnp.concatenate(feats, axis=1)
    return feat @ params["fc_w"].T + params["fc_b"]


# -----------------------------------------------------------------------------
# Main
# -----------------------------------------------------------------------------
if __name__ == "__main__":
    cfg = dict(
        MODEL="rand",
        BATCH_SIZE=2,
        MAX_SENT_LEN=16,
        WORD_DIM=16,
        VOCAB_SIZE=20,
        CLASS_SIZE=4,
        FILTERS=[3, 5],
        FILTER_NUM=[4, 4],
        DROPOUT_PROB=0.5,
    )
    key = jax.random.PRNGKey(0)
    k_emb, k_inp, k_fc_w, k_fc_b, *k_conv = jax.random.split(
        key, 5 + 2 * len(cfg["FILTERS"]))

    # Deterministic parameter init (shapes match the nn.Module's __init__).
    params = {}
    params["emb"] = jax.random.normal(
        k_emb, (cfg["VOCAB_SIZE"] + 2, cfg["WORD_DIM"]), jnp.float32) * 0.1
    params["conv_w"] = []
    params["conv_b"] = []
    total_feat = 0
    for i, k in enumerate(cfg["FILTERS"]):
        f_num = cfg["FILTER_NUM"][i]
        params["conv_w"].append(
            jax.random.normal(k_conv[2 * i], (f_num, 1, k, k), jnp.float32) * 0.2)
        params["conv_b"].append(
            jax.random.normal(k_conv[2 * i + 1], (f_num,), jnp.float32) * 0.1)
        hp = (cfg["MAX_SENT_LEN"] - k + 1) // 2
        wp = (cfg["WORD_DIM"] - k + 1) // 2
        total_feat += hp * wp * f_num
    params["fc_w"] = jax.random.normal(
        k_fc_w, (cfg["CLASS_SIZE"], total_feat), jnp.float32) * 0.05
    params["fc_b"] = jax.random.normal(
        k_fc_b, (cfg["CLASS_SIZE"],), jnp.float32) * 0.1

    # Example input: token ids (B, MAX_SENT_LEN).
    inp = jax.random.randint(
        k_inp, (cfg["BATCH_SIZE"], cfg["MAX_SENT_LEN"]), 0, cfg["VOCAB_SIZE"] + 2,
        dtype=jnp.int32)

    # One-time parameter/layout prep, then the jitted steady-state forward.
    prepped, static = prepare_params(params, cfg)
    forward = build_forward(cfg, static)
    out = jax.block_until_ready(
        forward(inp, params["emb"], prepped["wconv_all"],
                prepped["wfc_all"], prepped["packed"]))

    ref = jax.block_until_ready(cnn2d_reference(inp, params, cfg))
    assert out.shape == (cfg["BATCH_SIZE"], cfg["CLASS_SIZE"]), out.shape
    assert jnp.allclose(out, ref, rtol=5e-3, atol=5e-3), (
        "mismatch", float(jnp.max(jnp.abs(out - ref))))

    print("KERNEL_OK")
</pallas_src>

<mosaic_0001>
module attributes {stable_mosaic.version = 11 : i64} {
  func.func @kernel(%arg0: i32, %arg1: memref<2x4x50x49xf32, #tpu.memory_space<vmem>>, %arg2: memref<2x8x51xf32, #tpu.memory_space<vmem>>, %arg3: memref<2x49x16xf32, #tpu.memory_space<vmem>>, %arg4: memref<40x16xf32, #tpu.memory_space<vmem>>, %arg5: memref<2x4xf32, #tpu.memory_space<vmem>>) attributes {dimension_semantics = [#tpu.dimension_semantics<arbitrary>], iteration_bounds = array<i64: 1>, scalar_prefetch = 0 : i64, scratch_operands = 0 : i64, tpu.core_type = #tpu.core_type<tc>, window_params = [{pipeline_mode = #tpu.pipeline_mode<synchronous>, transform_indices = @transform_0, window_bounds = array<i64: 2, 4, 50, 49>}, {pipeline_mode = #tpu.pipeline_mode<synchronous>, transform_indices = @transform_1, window_bounds = array<i64: 2, 8, 51>}, {pipeline_mode = #tpu.pipeline_mode<synchronous>, transform_indices = @transform_2, window_bounds = array<i64: 2, 49, 16>}, {pipeline_mode = #tpu.pipeline_mode<synchronous>, transform_indices = @transform_3, window_bounds = array<i64: 40, 16>}, {pipeline_mode = #tpu.pipeline_mode<synchronous>, transform_indices = @transform_4, window_bounds = array<i64: 2, 4>}]} {
    %c0 = arith.constant 0 : index
    %c0_0 = arith.constant 0 : index
    %0 = vector.load %arg4[%c0, %c0_0] : memref<40x16xf32, #tpu.memory_space<vmem>>, vector<8x16xf32>
    %c8 = arith.constant 8 : index
    %c0_1 = arith.constant 0 : index
    %1 = vector.load %arg4[%c8, %c0_1] : memref<40x16xf32, #tpu.memory_space<vmem>>, vector<16x4xf32>
    %c24 = arith.constant 24 : index
    %c0_2 = arith.constant 0 : index
    %2 = vector.load %arg4[%c24, %c0_2] : memref<40x16xf32, #tpu.memory_space<vmem>>, vector<2x8xf32>
    %c32 = arith.constant 32 : index
    %c0_3 = arith.constant 0 : index
    %3 = vector.load %arg4[%c32, %c0_3] : memref<40x16xf32, #tpu.memory_space<vmem>>, vector<1x4xf32>
    %cst = arith.constant 0.000000e+00 : f32
    %4 = vector.broadcast %cst : f32 to vector<2x4xf32>
    %c0_4 = arith.constant 0 : index
    %c0_5 = arith.constant 0 : index
    %c0_6 = arith.constant 0 : index
    %5 = vector.load %arg2[%c0_4, %c0_5, %c0_6] : memref<2x8x51xf32, #tpu.memory_space<vmem>>, vector<1x8x51xf32>
    %6 = vector.shape_cast %5 : vector<1x8x51xf32> to vector<8x51xf32>
    %7 = vector.extract_strided_slice %6 {offsets = [0, 0], sizes = [8, 50], strides = [1, 1]} : vector<8x51xf32> to vector<8x50xf32>
    %8 = vector.extract_strided_slice %6 {offsets = [0, 50], sizes = [8, 1], strides = [1, 1]} : vector<8x51xf32> to vector<8x1xf32>
    %c0_7 = arith.constant 0 : index
    %c0_8 = arith.constant 0 : index
    %c0_9 = arith.constant 0 : index
    %c0_10 = arith.constant 0 : index
    %9 = vector.load %arg1[%c0_7, %c0_8, %c0_9, %c0_10] : memref<2x4x50x49xf32, #tpu.memory_space<vmem>>, vector<1x1x50x49xf32>
    %10 = vector.shape_cast %9 : vector<1x1x50x49xf32> to vector<50x49xf32>
    %cst_11 = arith.constant dense<0.000000e+00> : vector<8x49xf32>
    %11 = tpu.matmul %7, %10, %cst_11 {dimension_numbers = #tpu.dot_dimension_numbers<[1], [0], [0], [1], [0, 0, 1, 1], [], []>} : vector<8x50xf32>, vector<50x49xf32>, vector<8x49xf32> -> vector<8x49xf32>
    %c0_12 = arith.constant 0 : index
    %c1 = arith.constant 1 : index
    %c0_13 = arith.constant 0 : index
    %c0_14 = arith.constant 0 : index
    %12 = vector.load %arg1[%c0_12, %c1, %c0_13, %c0_14] : memref<2x4x50x49xf32, #tpu.memory_space<vmem>>, vector<1x1x50x49xf32>
    %13 = vector.shape_cast %12 : vector<1x1x50x49xf32> to vector<50x49xf32>
    %cst_15 = arith.constant dense<0.000000e+00> : vector<8x49xf32>
    %14 = tpu.matmul %7, %13, %cst_15 {dimension_numbers = #tpu.dot_dimension_numbers<[1], [0], [0], [1], [0, 0, 1, 1], [], []>} : vector<8x50xf32>, vector<50x49xf32>, vector<8x49xf32> -> vector<8x49xf32>
    %15 = arith.maximumf %11, %14 : vector<8x49xf32>
    %c0_16 = arith.constant 0 : index
    %c2 = arith.constant 2 : index
    %c0_17 = arith.constant 0 : index
    %c0_18 = arith.constant 0 : index
    %16 = vector.load %arg1[%c0_16, %c2, %c0_17, %c0_18] : memref<2x4x50x49xf32, #tpu.memory_space<vmem>>, vector<1x1x50x49xf32>
    %17 = vector.shape_cast %16 : vector<1x1x50x49xf32> to vector<50x49xf32>
    %cst_19 = arith.constant dense<0.000000e+00> : vector<8x49xf32>
    %18 = tpu.matmul %7, %17, %cst_19 {dimension_numbers = #tpu.dot_dimension_numbers<[1], [0], [0], [1], [0, 0, 1, 1], [], []>} : vector<8x50xf32>, vector<50x49xf32>, vector<8x49xf32> -> vector<8x49xf32>
    %19 = arith.maximumf %15, %18 : vector<8x49xf32>
    %c0_20 = arith.constant 0 : index
    %c3 = arith.constant 3 : index
    %c0_21 = arith.constant 0 : index
    %c0_22 = arith.constant 0 : index
    %20 = vector.load %arg1[%c0_20, %c3, %c0_21, %c0_22] : memref<2x4x50x49xf32, #tpu.memory_space<vmem>>, vector<1x1x50x49xf32>
    %21 = vector.shape_cast %20 : vector<1x1x50x49xf32> to vector<50x49xf32>
    %cst_23 = arith.constant dense<0.000000e+00> : vector<8x49xf32>
    %22 = tpu.matmul %7, %21, %cst_23 {dimension_numbers = #tpu.dot_dimension_numbers<[1], [0], [0], [1], [0, 0, 1, 1], [], []>} : vector<8x50xf32>, vector<50x49xf32>, vector<8x49xf32> -> vector<8x49xf32>
    %23 = arith.maximumf %19, %22 : vector<8x49xf32>
    %24 = vector.broadcast %8 : vector<8x1xf32> to vector<8x49xf32>
    %25 = arith.addf %23, %24 : vector<8x49xf32>
    %cst_24 = arith.constant 0.000000e+00 : f32
    %26 = vector.broadcast %cst_24 : f32 to vector<8x49xf32>
    %27 = arith.maximumf %25, %26 : vector<8x49xf32>
    %c0_25 = arith.constant 0 : index
    %c0_26 = arith.constant 0 : index
    %c0_27 = arith.constant 0 : index
    %28 = vector.load %arg3[%c0_25, %c0_26, %c0_27] : memref<2x49x16xf32, #tpu.memory_space<vmem>>, vector<1x49x16xf32>
    %29 = vector.shape_cast %28 : vector<1x49x16xf32> to vector<49x16xf32>
    %cst_28 = arith.constant dense<0.000000e+00> : vector<8x16xf32>
    %30 = tpu.matmul %27, %29, %cst_28 {dimension_numbers = #tpu.dot_dimension_numbers<[1], [0], [0], [1], [0, 0, 1, 1], [], []>} : vector<8x49xf32>, vector<49x16xf32>, vector<8x16xf32> -> vector<8x16xf32>
    %31 = arith.mulf %30, %0 : vector<8x16xf32>
    %cst_29 = arith.constant dense<0.000000e+00> : vector<8x4xf32>
    %32 = tpu.matmul %31, %1, %cst_29 {dimension_numbers = #tpu.dot_dimension_numbers<[1], [0], [0], [1], [0, 0, 1, 1], [], []>} : vector<8x16xf32>, vector<16x4xf32>, vector<8x4xf32> -> vector<8x4xf32>
    %cst_30 = arith.constant dense<0.000000e+00> : vector<2x4xf32>
    %33 = tpu.matmul %2, %32, %cst_30 {dimension_numbers = #tpu.dot_dimension_numbers<[1], [0], [0], [1], [0, 0, 1, 1], [], []>} : vector<2x8xf32>, vector<8x4xf32>, vector<2x4xf32> -> vector<2x4xf32>
    %34 = arith.addf %4, %33 : vector<2x4xf32>
    %c1_31 = arith.constant 1 : index
    %c0_32 = arith.constant 0 : index
    %c0_33 = arith.constant 0 : index
    %35 = vector.load %arg2[%c1_31, %c0_32, %c0_33] : memref<2x8x51xf32, #tpu.memory_space<vmem>>, vector<1x8x51xf32>
    %36 = vector.shape_cast %35 : vector<1x8x51xf32> to vector<8x51xf32>
    %37 = vector.extract_strided_slice %36 {offsets = [0, 0], sizes = [8, 50], strides = [1, 1]} : vector<8x51xf32> to vector<8x50xf32>
    %38 = vector.extract_strided_slice %36 {offsets = [0, 50], sizes = [8, 1], strides = [1, 1]} : vector<8x51xf32> to vector<8x1xf32>
    %c1_34 = arith.constant 1 : index
    %c0_35 = arith.constant 0 : index
    %c0_36 = arith.constant 0 : index
    %c0_37 = arith.constant 0 : index
    %39 = vector.load %arg1[%c1_34, %c0_35, %c0_36, %c0_37] : memref<2x4x50x49xf32, #tpu.memory_space<vmem>>, vector<1x1x50x49xf32>
    %40 = vector.shape_cast %39 : vector<1x1x50x49xf32> to vector<50x49xf32>
    %cst_38 = arith.constant dense<0.000000e+00> : vector<8x49xf32>
    %41 = tpu.matmul %37, %40, %cst_38 {dimension_numbers = #tpu.dot_dimension_numbers<[1], [0], [0], [1], [0, 0, 1, 1], [], []>} : vector<8x50xf32>, vector<50x49xf32>, vector<8x49xf32> -> vector<8x49xf32>
    %c1_39 = arith.constant 1 : index
    %c1_40 = arith.constant 1 : index
    %c0_41 = arith.constant 0 : index
    %c0_42 = arith.constant 0 : index
    %42 = vector.load %arg1[%c1_39, %c1_40, %c0_41, %c0_42] : memref<2x4x50x49xf32, #tpu.memory_space<vmem>>, vector<1x1x50x49xf32>
    %43 = vector.shape_cast %42 : vector<1x1x50x49xf32> to vector<50x49xf32>
    %cst_43 = arith.constant dense<0.000000e+00> : vector<8x49xf32>
    %44 = tpu.matmul %37, %43, %cst_43 {dimension_numbers = #tpu.dot_dimension_numbers<[1], [0], [0], [1], [0, 0, 1, 1], [], []>} : vector<8x50xf32>, vector<50x49xf32>, vector<8x49xf32> -> vector<8x49xf32>
    %45 = arith.maximumf %41, %44 : vector<8x49xf32>
    %c1_44 = arith.constant 1 : index
    %c2_45 = arith.constant 2 : index
    %c0_46 = arith.constant 0 : index
    %c0_47 = arith.constant 0 : index
    %46 = vector.load %arg1[%c1_44, %c2_45, %c0_46, %c0_47] : memref<2x4x50x49xf32, #tpu.memory_space<vmem>>, vector<1x1x50x49xf32>
    %47 = vector.shape_cast %46 : vector<1x1x50x49xf32> to vector<50x49xf32>
    %cst_48 = arith.constant dense<0.000000e+00> : vector<8x49xf32>
    %48 = tpu.matmul %37, %47, %cst_48 {dimension_numbers = #tpu.dot_dimension_numbers<[1], [0], [0], [1], [0, 0, 1, 1], [], []>} : vector<8x50xf32>, vector<50x49xf32>, vector<8x49xf32> -> vector<8x49xf32>
    %49 = arith.maximumf %45, %48 : vector<8x49xf32>
    %c1_49 = arith.constant 1 : index
    %c3_50 = arith.constant 3 : index
    %c0_51 = arith.constant 0 : index
    %c0_52 = arith.constant 0 : index
    %50 = vector.load %arg1[%c1_49, %c3_50, %c0_51, %c0_52] : memref<2x4x50x49xf32, #tpu.memory_space<vmem>>, vector<1x1x50x49xf32>
    %51 = vector.shape_cast %50 : vector<1x1x50x49xf32> to vector<50x49xf32>
    %cst_53 = arith.constant dense<0.000000e+00> : vector<8x49xf32>
    %52 = tpu.matmul %37, %51, %cst_53 {dimension_numbers = #tpu.dot_dimension_numbers<[1], [0], [0], [1], [0, 0, 1, 1], [], []>} : vector<8x50xf32>, vector<50x49xf32>, vector<8x49xf32> -> vector<8x49xf32>
    %53 = arith.maximumf %49, %52 : vector<8x49xf32>
    %54 = vector.broadcast %38 : vector<8x1xf32> to vector<8x49xf32>
    %55 = arith.addf %53, %54 : vector<8x49xf32>
    %cst_54 = arith.constant 0.000000e+00 : f32
    %56 = vector.broadcast %cst_54 : f32 to vector<8x49xf32>
    %57 = arith.maximumf %55, %56 : vector<8x49xf32>
    %c1_55 = arith.constant 1 : index
    %c0_56 = arith.constant 0 : index
    %c0_57 = arith.constant 0 : index
    %58 = vector.load %arg3[%c1_55, %c0_56, %c0_57] : memref<2x49x16xf32, #tpu.memory_space<vmem>>, vector<1x49x16xf32>
    %59 = vector.shape_cast %58 : vector<1x49x16xf32> to vector<49x16xf32>
    %cst_58 = arith.constant dense<0.000000e+00> : vector<8x16xf32>
    %60 = tpu.matmul %57, %59, %cst_58 {dimension_numbers = #tpu.dot_dimension_numbers<[1], [0], [0], [1], [0, 0, 1, 1], [], []>} : vector<8x49xf32>, vector<49x16xf32>, vector<8x16xf32> -> vector<8x16xf32>
    %61 = arith.mulf %60, %0 : vector<8x16xf32>
    %cst_59 = arith.constant dense<0.000000e+00> : vector<8x4xf32>
    %62 = tpu.matmul %61, %1, %cst_59 {dimension_numbers = #tpu.dot_dimension_numbers<[1], [0], [0], [1], [0, 0, 1, 1], [], []>} : vector<8x16xf32>, vector<16x4xf32>, vector<8x4xf32> -> vector<8x4xf32>
    %cst_60 = arith.constant dense<0.000000e+00> : vector<2x4xf32>
    %63 = tpu.matmul %2, %62, %cst_60 {dimension_numbers = #tpu.dot_dimension_numbers<[1], [0], [0], [1], [0, 0, 1, 1], [], []>} : vector<2x8xf32>, vector<8x4xf32>, vector<2x4xf32> -> vector<2x4xf32>
    %64 = arith.addf %34, %63 : vector<2x4xf32>
    %65 = vector.broadcast %3 : vector<1x4xf32> to vector<2x4xf32>
    %66 = arith.addf %64, %65 : vector<2x4xf32>
    %c0_61 = arith.constant 0 : index
    %c0_62 = arith.constant 0 : index
    %67 = vector.load %arg5[%c0_61, %c0_62] : memref<2x4xf32, #tpu.memory_space<vmem>>, vector<2x4xf32>
    tpu.vector_store %arg5[%c0_61, %c0_62], %66 {strides = array<i32>} : memref<2x4xf32, #tpu.memory_space<vmem>>, vector<2x4xf32>,
    return
  }
  func.func @transform_0(%arg0: i32) -> (i32, i32, i32, i32) {
    %c0_i32 = arith.constant 0 : i32
    %c0_i32_0 = arith.constant 0 : i32
    %c0_i32_1 = arith.constant 0 : i32
    %c0_i32_2 = arith.constant 0 : i32
    %c0_i32_3 = arith.constant 0 : i32
    return %c0_i32, %c0_i32_0, %c0_i32_1, %c0_i32_2 : i32, i32, i32, i32
  }
  func.func @transform_1(%arg0: i32) -> (i32, i32, i32) {
    %c0_i32 = arith.constant 0 : i32
    %c0_i32_0 = arith.constant 0 : i32
    %c0_i32_1 = arith.constant 0 : i32
    %c0_i32_2 = arith.constant 0 : i32
    return %c0_i32, %c0_i32_0, %c0_i32_1 : i32, i32, i32
  }
  func.func @transform_2(%arg0: i32) -> (i32, i32, i32) {
    %c0_i32 = arith.constant 0 : i32
    %c0_i32_0 = arith.constant 0 : i32
    %c0_i32_1 = arith.constant 0 : i32
    %c0_i32_2 = arith.constant 0 : i32
    return %c0_i32, %c0_i32_0, %c0_i32_1 : i32, i32, i32
  }
  func.func @transform_3(%arg0: i32) -> (i32, i32) {
    %c0_i32 = arith.constant 0 : i32
    %c0_i32_0 = arith.constant 0 : i32
    %c0_i32_1 = arith.constant 0 : i32
    return %c0_i32, %c0_i32_0 : i32, i32
  }
  func.func @transform_4(%arg0: i32) -> (i32, i32) {
    %c0_i32 = arith.constant 0 : i32
    %c0_i32_0 = arith.constant 0 : i32
    %c0_i32_1 = arith.constant 0 : i32
    return %c0_i32, %c0_i32_0 : i32, i32
  }
}

</mosaic_0001>

<bundles_post_ra>
// kernel: forward.1
= control target key start
LH: loop header
LB: loop body
LE: loop exit
PB: predicated region body
PF: predicated region fallthrough
CT: control target
= control target key end

     0   :  { %vm35_vm0 = vcmask 1041408   ;;  %s882_s0 = inlined_call_operand.vmem [shape: f32[2,4,50,49], index: 0, kind: input, shape index: {}]   ;;  %s883_s1 = inlined_call_operand.vmem [shape: f32[2,8,51], index: 1, kind: input, shape index: {}]   ;;  %s884_s2 = inlined_call_operand.vmem [shape: f32[2,49,16], index: 2, kind: input, shape index: {}]   ;;  %s885_s3 = inlined_call_operand.vmem [shape: f32[40,16], index: 3, kind: input, shape index: {}]   ;;  %s886_s4 = inlined_call_operand.hbm [shape: f32[2,4], index: 4, kind: output, shape index: {}]  }
   0x1   :  { %v498_v0 = vld [vmem:[%s882_s0 + $0xa0] sm:$0x3]  ;;  %v497_v1 = vld [vmem:[%s882_s0 + $0x98] sm:$0xff]  ;;  %v30_v3 = vld [vmem:[%s882_s0 + $0x30] sm:$0x3] }
   0x2   :  { %v507_v2 = vld [vmem:[%s882_s0 + $0xd8] sm:$0x3]  ;;  %499 = vmatpush.msk.msra.mxu2 %vm35_vm0, %v498_v0  ;;  %v489_v4 = vld [vmem:[%s882_s0 + $0x68] sm:$0x3]  ;;  %v496_v5 = vld [vmem:[%s882_s0 + $0x90] sm:$0xff]  ;;  %481 = vmatpush.msk.msra.mxu0 %vm35_vm0, %v30_v3 }
   0x3   :  { %508 = vmatpush.msk.msra.mxu3 %vm35_vm0, %v507_v2  ;;  %490 = vmatpush.msk.msra.mxu1 %vm35_vm0, %v489_v4  ;;  %v506_v6 = vld [vmem:[%s882_s0 + $0xd0] sm:$0xff]  ;;  %v29_v7 = vld [vmem:[%s882_s0 + $0x28] sm:$0xff]  ;;  %v488_v8 = vld [vmem:[%s882_s0 + $0x60] sm:$0xff] }
   0x4   :  { %112 = vmatpush.msra.mxu2 %v497_v1  ;;  %v505_v9 = vld [vmem:[%s882_s0 + $0xc8] sm:$0xff]  ;;  %v28_v10 = vld [vmem:[%s882_s0 + $0x20] sm:$0xff]  ;;  %49 = vmatpush.msra.mxu0 %v29_v7  ;;  %v487_v12 = vld [vmem:[%s882_s0 + $0x58] sm:$0xff] }
   0x5   :  { %144 = vmatpush.msra.mxu3 %v506_v6  ;;  %80 = vmatpush.msra.mxu1 %v488_v8  ;;  %v495_v11 = vld [vmem:[%s882_s0 + $0x88] sm:$0xff]  ;;  %v504_v13 = vld [vmem:[%s882_s0 + $0xc0] sm:$0xff]  ;;  %v27_v14 = vld [vmem:[%s882_s0 + $0x18] sm:$0xff] }
   0x6   :  { %113 = vmatpush.msra.mxu2 %v496_v5  ;;  %v486_v15 = vld [vmem:[%s882_s0 + $0x50] sm:$0xff]  ;;  %50 = vmatpush.msra.mxu0 %v28_v10  ;;  %v494_v16 = vld [vmem:[%s882_s0 + $0x80] sm:$0xff]  ;;  %v503_v17 = vld [vmem:[%s882_s0 + $0xb8] sm:$0xff] }
   0x7   :  { %145 = vmatpush.msra.mxu3 %v505_v9  ;;  %81 = vmatpush.msra.mxu1 %v487_v12  ;;  %v26_v18 = vld [vmem:[%s882_s0 + $0x10] sm:$0xff]  ;;  %v485_v19 = vld [vmem:[%s882_s0 + $0x48] sm:$0xff]  ;;  %v493_v20 = vld [vmem:[%s882_s0 + $0x78] sm:$0xff] }
   0x8   :  { %114 = vmatpush.msra.mxu2 %v495_v11  ;;  %51 = vmatpush.msra.mxu0 %v27_v14  ;;  %v502_v21 = vld [vmem:[%s882_s0 + $0xb0] sm:$0xff]  ;;  %v25_v23 = vld [vmem:[%s882_s0 + $0x8] sm:$0xff]  ;;  %v484_v24 = vld [vmem:[%s882_s0 + $0x40] sm:$0xff] }
   0x9   :  { %146 = vmatpush.msra.mxu3 %v504_v13  ;;  %82 = vmatpush.msra.mxu1 %v486_v15  ;;  %v492_v22 = vld [vmem:[%s882_s0 + $0x70] sm:$0xff]  ;;  %v501_v25 = vld [vmem:[%s882_s0 + $0xa8] sm:$0xff] }
   0xa   :  { %115 = vmatpush.msra.mxu2 %v494_v16  ;;  %52 = vmatpush.msra.mxu0 %v26_v18 }
   0xb   :  { %147 = vmatpush.msra.mxu3 %v503_v17  ;;  %83 = vmatpush.msra.mxu1 %v485_v19 }
   0xc   :  { %9 = vsyncpa [#allocation3], 0  ;;  %116 = vmatpush.msra.mxu2 %v493_v20  ;;  %v23_v26 = vld [vmem:[%s883_s1] sm:$0xff]  ;;  %vm31_vm1 = vcmask 408576   ;;  %53 = vmatpush.msra.mxu0 %v25_v23  ;;  %v483_v28 = vld [vmem:[%s882_s0 + $0x38] sm:$0xff]  ;;  %vm172_vm2 = vcmask 1040384  }
   0xd   :  { %148 = vmatpush.msra.mxu3 %v502_v21  ;;  %84 = vmatpush.msra.mxu1 %v484_v24  ;;  %v24_v27 = vld [vmem:[%s882_s0] sm:$0xff]  ;;  %v167_v29 = vld [vmem:[%s884_s2 + $0x30] sm:$0x1]  ;;  %v592_v30 = vmov 50   ;;  %v721_v31 = vld [vmem:[%s883_s1 + $0x8] sm:$0xff]  ;;  %vm168_vm3 = vcmask 400384  }
   0xe   :  { %117 = vmatpush.msra.mxu2 %v492_v22  ;;  %54 = vmatpush.msra.mxu0 %v24_v27  ;;  %v166_v32 = vld [vmem:[%s884_s2 + $0x28] sm:$0xff]  ;;  %v165_v33 = vld [vmem:[%s884_s2 + $0x20] sm:$0xff]  ;;  %v164_v34 = vld [vmem:[%s884_s2 + $0x18] sm:$0xff]  ;;  %vm197_vm4 = vcmask 130048   ;;  %vm417_vm5 = vcmask 64512   ;;  %s593_s7 = smov [#allocation2]  }
   0xf   :  { %149 = vmatpush.msra.mxu3 %v501_v25  ;;  %500 = vmatmul.msk.f32.vlgmr.msra.gmra.mxu2 %vm31_vm1, %v23_v26  ;;  %v163_v35 = vld [vmem:[%s884_s2 + $0x10] sm:$0xff]  ;;  %v162_v36 = vld [vmem:[%s884_s2 + $0x8] sm:$0xff]  ;;  %v161_v37 = vld [vmem:[%s884_s2] sm:$0xff]  ;;  %s470_s8 = sshll.u32 %s593_s7, 4  ;;  %s472_s11 = sshll.u32 %s886_s4, 4  ;;  %vm463_vm6 = vcmask 25600   ;;  %s471_s8 = int_to_ptr.vmem [resolvable:$true] %s470_s8  ;;  %s473_s11 = int_to_ptr.hbm [resolvable:$true] %s472_s11 }
  0x10   :  { %509 = vmatmul.msk.f32.vlgmr.msra.gmra.mxu3 %vm31_vm1, %v23_v26  ;;  %85 = vmatpush.msra.mxu1 %v483_v28  ;;  %v520_v38 = vld [vmem:[%s882_s0 + $0x110] sm:$0x3]  ;;  %v529_v39 = vld [vmem:[%s882_s0 + $0x148] sm:$0x3]  ;;  %v528_v41 = vld [vmem:[%s882_s0 + $0x140] sm:$0xff] }
  0x11   :  { %482 = vmatmul.msk.f32.vlgmr.msra.gmra.mxu0 %vm31_vm1, %v23_v26  ;;  %491 = vmatmul.msk.f32.vlgmr.msra.gmra.mxu1 %vm31_vm1, %v23_v26  ;;  %v519_v40 = vld [vmem:[%s882_s0 + $0x108] sm:$0xff]  ;;  %v518_v42 = vld [vmem:[%s882_s0 + $0x100] sm:$0xff]  ;;  %v527_v43 = vld [vmem:[%s882_s0 + $0x138] sm:$0xff] }
  0x12   :  { %564 = vset.pattern.permute.xlu0 %v592_v30  ;;  %510 = vmatpush.msk.msrb.mxu0 %vm172_vm2, %v167_v29  ;;  %v20_v44 = vld [vmem:[%s885_s3 + $0x10] sm:$0xff]  ;;  %v19_v45 = vld [vmem:[%s885_s3 + $0x8] sm:$0xff]  ;;  %v517_v46 = vld [vmem:[%s882_s0 + $0xf8] sm:$0xff] }
  0x13   :  { %156 = vperm.xlu0 %564, %v23_v26   ;;  %521 = vmatpush.msk.msrb.mxu2 %vm35_vm0, %v520_v38  ;;  %v526_v47 = vld [vmem:[%s882_s0 + $0x130] sm:$0xff]  ;;  %v538_v48 = vld [vmem:[%s882_s0 + $0x180] sm:$0x3]  ;;  %v525_v50 = vld [vmem:[%s882_s0 + $0x128] sm:$0xff] }
  0x14   :  { %186 = vmatpush.msrb.mxu0 %v166_v32  ;;  %530 = vmatpush.msk.msrb.mxu3 %vm35_vm0, %v529_v39  ;;  %v516_v49 = vld [vmem:[%s882_s0 + $0xf0] sm:$0xff]  ;;  %v515_v61 = vld [vmem:[%s882_s0 + $0xe8] sm:$0xff]  ;;  %v524_v62 = vld [vmem:[%s882_s0 + $0x120] sm:$0xff] }
  0x15   :  { %247 = vmatpush.msrb.mxu2 %v519_v40  ;;  %215 = vmatpush.msrb.mxu1 %v20_v44  ;;  %v537_v63 = vld [vmem:[%s882_s0 + $0x178] sm:$0xff]  ;;  %v514_v1 = vld [vmem:[%s882_s0 + $0xe0] sm:$0xff]  ;;  %v536_v3 = vld [vmem:[%s882_s0 + $0x170] sm:$0xff] }
  0x16   :  { %187 = vmatpush.msrb.mxu0 %v165_v33  ;;  %278 = vmatpush.msrb.mxu3 %v528_v41  ;;  %v547_v0 = vld [vmem:[%s882_s0 + $0x1b8] sm:$0x3]  ;;  %v546_v4 = vld [vmem:[%s882_s0 + $0x1b0] sm:$0xff]  ;;  %v535_v5 = vld [vmem:[%s882_s0 + $0x168] sm:$0xff] }
  0x17   :  { %248 = vmatpush.msrb.mxu2 %v518_v42  ;;  %216 = vmatpush.msrb.mxu1 %v19_v45  ;;  %v523_v2 = vld [vmem:[%s882_s0 + $0x118] sm:$0xff]  ;;  %v545_v6 = vld [vmem:[%s882_s0 + $0x1a8] sm:$0xff]  ;;  %v534_v7 = vld [vmem:[%s882_s0 + $0x160] sm:$0xff] }
  0x18   :  { %188 = vmatpush.msrb.mxu0 %v164_v34  ;;  %279 = vmatpush.msrb.mxu3 %v527_v43  ;;  %v544_v8 = vld [vmem:[%s882_s0 + $0x1a0] sm:$0xff]  ;;  %v533_v9 = vld [vmem:[%s882_s0 + $0x158] sm:$0xff]  ;;  %v532_v11 = vld [vmem:[%s882_s0 + $0x150] sm:$0xff] }
  0x19   :  { %249 = vmatpush.msrb.mxu2 %v517_v46  ;;  %539 = vmatpush.msk.msra.mxu1 %vm35_vm0, %v538_v48  ;;  %v543_v10 = vld [vmem:[%s882_s0 + $0x198] sm:$0xff]  ;;  %v542_v12 = vld [vmem:[%s882_s0 + $0x190] sm:$0xff]  ;;  %v541_v13 = vld [vmem:[%s882_s0 + $0x188] sm:$0xff] }
  0x1a   :  { %189 = vmatpush.msrb.mxu0 %v163_v35  ;;  %280 = vmatpush.msrb.mxu3 %v526_v47  ;;  %v18_v14 = vld [vmem:[%s885_s3] sm:$0xff]  ;;  %v556_v17 = vld [vmem:[%s884_s2 + $0x68] sm:$0x1]  ;;  %v554_v19 = vld [vmem:[%s884_s2 + $0x58] sm:$0xff] }
  0x1b   :  { %354 = vperm.xlu0 %564, %v721_v31   ;;  %250 = vmatpush.msrb.mxu2 %v516_v49  ;;  %v555_v18 = vld [vmem:[%s884_s2 + $0x60] sm:$0xff]  ;;  %v553_v20 = vld [vmem:[%s884_s2 + $0x50] sm:$0xff]  ;;  %v552_v21 = vld [vmem:[%s884_s2 + $0x48] sm:$0xff] }
  0x1c   :  { %190 = vmatpush.msrb.mxu0 %v162_v36  ;;  %281 = vmatpush.msrb.mxu3 %v525_v50  ;;  %v551_v22 = vld [vmem:[%s884_s2 + $0x40] sm:$0xff]  ;;  %v550_v23 = vld [vmem:[%s884_s2 + $0x38] sm:$0xff] }
  0x1d   :  { %251 = vmatpush.msrb.mxu2 %v515_v61  ;;  %310 = vmatpush.msra.mxu1 %v537_v63  ;;  %v565_v40 = vld [vmem:[%s885_s3 + $0x20] ss:$0 sm:$0xff] }
  0x1e   :  { %191 = vmatpush.msrb.mxu0 %v161_v37  ;;  %282 = vmatpush.msrb.mxu3 %v524_v62  ;;  %v21_v37 = vld [vmem:[%s885_s3 + $0x18] sm:$0x3] }
  0x1f   :  { %252 = vmatpush.msrb.mxu2 %v514_v1  ;;  %311 = vmatpush.msra.mxu1 %v536_v3 }
  0x20   :  { %548 = vmatpush.msk.msra.mxu0 %vm35_vm0, %v547_v0  ;;  %283 = vmatpush.msrb.mxu3 %v523_v2 }
  0x21   :  { %522 = vmatmul.msk.f32.vlgmr.msrb.gmra.mxu2 %vm31_vm1, %v721_v31  ;;  %531 = vmatmul.msk.f32.vlgmr.msrb.gmra.mxu3 %vm31_vm1, %v721_v31 }
  0x22   :  { %342 = vmatpush.msra.mxu0 %v546_v4  ;;  %312 = vmatpush.msra.mxu1 %v535_v5 }
  0x23   :  { %411 = vmatpush.msra.mxu3 %v20_v44  ;;  %557 = vmatpush.msk.msra.mxu2 %vm172_vm2, %v556_v17 }
  0x24   :  { %343 = vmatpush.msra.mxu0 %v545_v6  ;;  %313 = vmatpush.msra.mxu1 %v534_v7 }
  0x25   :  { %412 = vmatpush.msra.mxu3 %v19_v45  ;;  %383 = vmatpush.msra.mxu2 %v555_v18 }
  0x26   :  { %344 = vmatpush.msra.mxu0 %v544_v8  ;;  %314 = vmatpush.msra.mxu1 %v533_v9 }
  0x27   :  { %384 = vmatpush.msra.mxu2 %v554_v19 }
  0x28   :  { %345 = vmatpush.msra.mxu0 %v543_v10  ;;  %315 = vmatpush.msra.mxu1 %v532_v11 }
  0x29   :  { %385 = vmatpush.msra.mxu2 %v553_v20 }
  0x2a   :  { %346 = vmatpush.msra.mxu0 %v542_v12 }
  0x2b   :  { %386 = vmatpush.msra.mxu2 %v552_v21 }
  0x2c   :  { %347 = vmatpush.msra.mxu0 %v541_v13 }
  0x2d   :  { %387 = vmatpush.msra.mxu2 %v551_v22 }
  0x2f   :  { %388 = vmatpush.msra.mxu2 %v550_v23 }
  0x85   :  { %v157_v58 = vpop.permute.xlu0 %156 }
  0x8d   :  { %v355_v32 = vpop.permute.xlu0 %354 }
  0x8e   :  { %v56_v51 = vpop.f32.mrf.mxu0  ;;  %v87_v52 = vpop.f32.mrf.mxu1 }
  0x8f   :  { %v90_v53 = vmax.f32 %v56_v51, %v87_v52 }
  0x92   :  { %v119_v54 = vpop.f32.mrf.mxu2 }
  0x93   :  { %v151_v55 = vpop.f32.mrf.mxu3  ;;  %v122_v56 = vmax.f32 %v90_v53, %v119_v54 }
  0x95   :  { %v154_v57 = vmax.f32 %v122_v56, %v151_v55 }
  0x97   :  { %v159_v59 = vadd.f32 %v157_v58, %v154_v57 }
  0x99   :  { %v160_v60 = vmax.f32 %v159_v59, 0.0 }
  0x9b   :  { %511 = vmatmul.msk.f32.vlgmr.msrb.gmra.mxu0 %vm168_vm3, %v160_v60 }
  0xa3   :  { %549 = vmatmul.msk.f32.vlgmr.msra.gmra.mxu0 %vm31_vm1, %v721_v31 }
  0xa4   :  { %v254_v25 = vpop.f32.mrf.mxu2  ;;  %v285_v26 = vpop.f32.mrf.mxu3 }
  0xa5   :  { %v288_v27 = vmax.f32 %v254_v25, %v285_v26 }
 0x118   :  { %v193_v15 = vpop.f32.mrf.mxu0 }
 0x119   :  { %v196_v16 = vmul.f32 %v193_v15, %v18_v14 }
 0x11b   :  { %512 = vmatmul.msk.f32.vlgmr.msrb.gmra.mxu1 %vm197_vm4, %v196_v16 }
 0x120   :  { %v349_v29 = vpop.f32.mrf.mxu0 }
 0x123   :  { %540 = vmatmul.msk.f32.vlgmr.msra.gmra.mxu1 %vm31_vm1, %v721_v31 }
 0x198   :  { %v218_v24 = vpop.f32.mrf.mxu1 }
 0x199   :  { %456 = vmatpush.msrb.mxu3 %v218_v24 }
 0x1a0   :  { %v317_v28 = vpop.f32.mrf.mxu1 }
 0x1a1   :  { %v320_v30 = vmax.f32 %v288_v27, %v317_v28 }
 0x1a3   :  { %v352_v31 = vmax.f32 %v320_v30, %v349_v29 }
 0x1a5   :  { %v357_v33 = vadd.f32 %v355_v32, %v352_v31 }
 0x1a7   :  { %v358_v34 = vmax.f32 %v357_v33, 0.0 }
 0x1a9   :  { %558 = vmatmul.msk.f32.vlgmr.msra.gmra.mxu2 %vm168_vm3, %v358_v34 }
 0x22c   :  { %v390_v35 = vpop.f32.mrf.mxu2 }
 0x22d   :  { %v393_v36 = vmul.f32 %v390_v35, %v18_v14 }
 0x22f   :  { %559 = vmatmul.msk.f32.vlgmr.msra.gmra.mxu3 %vm197_vm4, %v393_v36 }
 0x237   :  { %561 = vmatmul.msk.f32.vlgmr.msrb.gmra.mxu3 %vm417_vm5, %v21_v37 }
 0x2b2   :  { %v414_v38 = vpop.f32.mrf.mxu3 }
 0x2b3   :  { %436 = vmatpush.msrb.mxu1 %v414_v38 }
 0x2b4   :  { %560 = vmatmul.msk.f32.vlgmr.msrb.gmra.mxu1 %vm417_vm5, %v21_v37 }
 0x2ba   :  { %v458_v39 = vpop.f32.mrf.mxu3 }
 0x331   :  { %v438_v41 = vpop.f32.mrf.mxu1 }
 0x332   :  { %v459_v42 = vadd.f32 %v458_v39, %v438_v41 }
 0x334   :  { %v462_v43 = vadd.f32 %v565_v40, %v459_v42 }
 0x336   :  { %464 = vst.msk [vmem:[#allocation2] sm:$0x3] %vm463_vm6, %v462_v43 }
 0x337   :  { %475 = dma.vmem_to_hbm [thread:$0]  %s471_s8, 32, %s473_s11, [#allocation3]  }
 0x338   :  { %590 = dma.done.wait [#allocation3], 32  }
 0x339   :  { %591 = vsyncadd [#allocation3], 4294967264 }
 0x33a   :  { %480 = vsyncpa [#allocation3], 1 }

</bundles_post_ra>
